<compile_context>
chip_gen: v7x
topology: tpu7x:2x2x1
jax: 0.10.0
libtpu: 0.0.40
codegen_flags: <defaults>
</compile_context>

<pallas_src>
import functools

import jax
import jax.numpy as jnp
import numpy as np
from jax import lax
from jax.experimental import pallas as pl
from jax.experimental.pallas import tpu as pltpu


def _bridge_kernel(x_ref, m1_ref, s1_ref, b1_ref, m2_ref, s2_ref, b2_ref,
                   o_ref, xpad_ref, mid_ref, *, H, W, C0, C1, C2):
    """One batch element: fused (3x3 conv + folded BN + ReLU) x 2, all on-chip."""
    # ---- ConvBlock 1: SAME padding in VMEM, then 3 lane-dense matmuls --------
    xpad_ref[...] = jnp.zeros_like(xpad_ref)               # zero padded scratch
    xpad_ref[1:H + 1, C0:C0 + W * C0] = x_ref[...]         # interior <- input rows

    y = jnp.dot(xpad_ref[0:H, :], m1_ref[0], preferred_element_type=jnp.float32)
    y += jnp.dot(xpad_ref[1:H + 1, :], m1_ref[1], preferred_element_type=jnp.float32)
    y += jnp.dot(xpad_ref[2:H + 2, :], m1_ref[2], preferred_element_type=jnp.float32)
    y = jnp.maximum(y * s1_ref[...] + b1_ref[...], 0.0)    # folded BN + ReLU, (H, W*C1)

    # ---- ConvBlock 2: intermediate stays in VMEM (fused, no HBM round-trip) --
    mid_ref[...] = jnp.zeros_like(mid_ref)
    mid_ref[1:H + 1, C1:C1 + W * C1] = y

    z = jnp.dot(mid_ref[0:H, :], m2_ref[0], preferred_element_type=jnp.float32)
    z += jnp.dot(mid_ref[1:H + 1, :], m2_ref[1], preferred_element_type=jnp.float32)
    z += jnp.dot(mid_ref[2:H + 2, :], m2_ref[2], preferred_element_type=jnp.float32)
    z = jnp.maximum(z * s2_ref[...] + b2_ref[...], 0.0)    # (H, W*C2)

    o_ref[...] = z.astype(o_ref.dtype)                     # lane-dense store (last dim W*C2)


def _lower_conv_weight(w_hwio, W):
    """(3,3,Cin,Cout) HWIO -> (3, (W+2)*Cin, W*Cout) block-banded row-matmul weights.

    m[ky, p*Cin+ci, w*Cout+co] = w[ky, p-w, ci, co] for 0 <= p-w < 3 else 0, so
    out_rows[h] = sum_ky padded_rows[h+ky] @ m[ky] reproduces the 3x3 SAME conv.
    """
    kh, kw, cin, cout = w_hwio.shape
    band = (jnp.arange(W + 2)[None, :, None]
            == (jnp.arange(kw)[:, None, None] + jnp.arange(W)[None, None, :])
            ).astype(w_hwio.dtype)                              # (kw, W+2, W)
    m = jnp.einsum('xpw,yxio->ypiwo', band, w_hwio)             # (kh, W+2, cin, W, cout)
    return m.reshape(kh, (W + 2) * cin, W * cout)


def bridge_fused(x_nhwc, params):
    """Fused Bridge forward on NHWC input via a single Pallas kernel. Returns NHWC."""
    (w1, s1, b1), (w2, s2, b2) = params
    N, H, W, C0 = x_nhwc.shape
    C1, C2 = w1.shape[-1], w2.shape[-1]

    # wrapper-side glue (tiny, one-time): lowered weights + per-(w,channel) affines
    m1 = _lower_conv_weight(w1, W)                       # (3, (W+2)*C0, W*C1)
    m2 = _lower_conv_weight(w2, W)                       # (3, (W+2)*C1, W*C2)
    s1r = jnp.tile(s1.reshape(-1), W).reshape(1, W * C1)
    b1r = jnp.tile(b1.reshape(-1), W).reshape(1, W * C1)
    s2r = jnp.tile(s2.reshape(-1), W).reshape(1, W * C2)
    b2r = jnp.tile(b2.reshape(-1), W).reshape(1, W * C2)
    x_rows = x_nhwc.reshape(N, H, W * C0)                # lane-dense row layout

    kernel = functools.partial(_bridge_kernel, H=H, W=W, C0=C0, C1=C1, C2=C2)
    out_rows = pl.pallas_call(
        kernel,
        out_shape=jax.ShapeDtypeStruct((N, H, W * C2), x_nhwc.dtype),
        grid=(N,),
        in_specs=[
            pl.BlockSpec((None, H, W * C0), lambda n: (n, 0, 0)),
            pl.BlockSpec((3, (W + 2) * C0, W * C1), lambda n: (0, 0, 0)),
            pl.BlockSpec((1, W * C1), lambda n: (0, 0)),
            pl.BlockSpec((1, W * C1), lambda n: (0, 0)),
            pl.BlockSpec((3, (W + 2) * C1, W * C2), lambda n: (0, 0, 0)),
            pl.BlockSpec((1, W * C2), lambda n: (0, 0)),
            pl.BlockSpec((1, W * C2), lambda n: (0, 0)),
        ],
        out_specs=pl.BlockSpec((None, H, W * C2), lambda n: (n, 0, 0)),
        scratch_shapes=[
            pltpu.VMEM((H + 2, (W + 2) * C0), jnp.float32),   # padded input rows
            pltpu.VMEM((H + 2, (W + 2) * C1), jnp.float32),   # padded mid activation rows
        ],
        compiler_params=pltpu.CompilerParams(
            dimension_semantics=("parallel",)),
    )(x_rows, m1, s1r, b1r, m2, s2r, b2r)
    return out_rows.reshape(N, H, W, C2)


def make_convblock_params(key, cin, cout, eps=1e-5):
    """Deterministic ConvBlock params with BN + conv-bias folded to scale/bias."""
    k_w, k_b, k_g, k_beta = jax.random.split(key, 4)
    w = jax.random.normal(k_w, (3, 3, cin, cout), jnp.float32) * 0.1   # HWIO
    conv_b = jax.random.normal(k_b, (cout,), jnp.float32) * 0.1
    gamma = 1.0 + 0.1 * jax.random.normal(k_g, (cout,), jnp.float32)
    beta = 0.1 * jax.random.normal(k_beta, (cout,), jnp.float32)
    running_mean = jnp.zeros((cout,), jnp.float32)
    running_var = jnp.ones((cout,), jnp.float32)
    scale = gamma / jnp.sqrt(running_var + eps)
    bias = (conv_b - running_mean) * scale + beta
    return w, scale.reshape(1, cout), bias.reshape(1, cout)


@jax.jit
def bridge_forward(x_nchw, params):
    """Bridge forward. x_nchw: (N, Cin, H, W) -> (N, Cout, H, W)."""
    x = jnp.transpose(x_nchw, (0, 2, 3, 1))      # NCHW -> NHWC (glue)
    x = bridge_fused(x, params)                  # fused ConvBlock1 + ConvBlock2 kernel
    return jnp.transpose(x, (0, 3, 1, 2))        # NHWC -> NCHW


def _reference_forward(x_nchw, params):
    """Pure-JAX reference for validation (lax conv, NCHW/OIHW)."""
    x = x_nchw
    for (w_hwio, scale, bias) in params:
        w_oihw = jnp.transpose(w_hwio, (3, 2, 0, 1))
        y = lax.conv_general_dilated(
            x, w_oihw, window_strides=(1, 1), padding=((1, 1), (1, 1)),
            dimension_numbers=("NCHW", "OIHW", "NCHW"))
        y = y * scale[0][None, :, None, None] + bias[0][None, :, None, None]
        x = jnp.maximum(y, 0.0)
    return x


if __name__ == "__main__":
    N, Cin, Cout, H, W = 2, 4, 8, 16, 16

    key = jax.random.PRNGKey(0)
    k_x, k_p1, k_p2 = jax.random.split(key, 3)

    x = jax.random.normal(k_x, (N, Cin, H, W), jnp.float32)   # NCHW, like PyTorch
    params = (
        make_convblock_params(k_p1, Cin, Cout),   # ConvBlock(in_channels, out_channels)
        make_convblock_params(k_p2, Cout, Cout),  # ConvBlock(out_channels, out_channels)
    )

    out = bridge_forward(x, params)
    out = jax.block_until_ready(out)

    ref = jax.block_until_ready(_reference_forward(x, params))
    np.testing.assert_allclose(np.asarray(out), np.asarray(ref), rtol=1e-3, atol=1e-3)

    print("KERNEL_OK")
</pallas_src>

<mosaic_0001>
module attributes {stable_mosaic.version = 11 : i64} {
  func.func @_bridge_kernel(%arg0: i32, %arg1: memref<1x16x64xf32, #tpu.memory_space<vmem>>, %arg2: memref<3x72x128xf32, #tpu.memory_space<vmem>>, %arg3: memref<1x128xf32, #tpu.memory_space<vmem>>, %arg4: memref<1x128xf32, #tpu.memory_space<vmem>>, %arg5: memref<3x144x128xf32, #tpu.memory_space<vmem>>, %arg6: memref<1x128xf32, #tpu.memory_space<vmem>>, %arg7: memref<1x128xf32, #tpu.memory_space<vmem>>, %arg8: memref<1x16x128xf32, #tpu.memory_space<vmem>>, %arg9: memref<18x72xf32, #tpu.memory_space<vmem>>, %arg10: memref<18x144xf32, #tpu.memory_space<vmem>>) attributes {dimension_semantics = [#tpu.dimension_semantics<parallel>], iteration_bounds = array<i64: 2>, scalar_prefetch = 0 : i64, scratch_operands = 2 : i64, tpu.core_type = #tpu.core_type<tc>, window_params = [{transform_indices = @transform_0, window_bounds = array<i64: 1, 16, 64>}, {pipeline_mode = #tpu.pipeline_mode<synchronous>, transform_indices = @transform_1, window_bounds = array<i64: 3, 72, 128>}, {pipeline_mode = #tpu.pipeline_mode<synchronous>, transform_indices = @transform_2, window_bounds = array<i64: 1, 128>}, {pipeline_mode = #tpu.pipeline_mode<synchronous>, transform_indices = @transform_3, window_bounds = array<i64: 1, 128>}, {pipeline_mode = #tpu.pipeline_mode<synchronous>, transform_indices = @transform_4, window_bounds = array<i64: 3, 144, 128>}, {pipeline_mode = #tpu.pipeline_mode<synchronous>, transform_indices = @transform_5, window_bounds = array<i64: 1, 128>}, {pipeline_mode = #tpu.pipeline_mode<synchronous>, transform_indices = @transform_6, window_bounds = array<i64: 1, 128>}, {transform_indices = @transform_7, window_bounds = array<i64: 1, 16, 128>}]} {
    %cst = arith.constant 0.000000e+00 : f32
    %0 = vector.broadcast %cst : f32 to vector<18x72xf32>
    %c0 = arith.constant 0 : index
    %c0_0 = arith.constant 0 : index
    %1 = vector.load %arg9[%c0, %c0_0] : memref<18x72xf32, #tpu.memory_space<vmem>>, vector<18x72xf32>
    tpu.vector_store %arg9[%c0, %c0_0], %0 {strides = array<i32>} : memref<18x72xf32, #tpu.memory_space<vmem>>, vector<18x72xf32>,
    %c0_1 = arith.constant 0 : index
    %c0_2 = arith.constant 0 : index
    %c0_3 = arith.constant 0 : index
    %2 = vector.load %arg1[%c0_1, %c0_2, %c0_3] : memref<1x16x64xf32, #tpu.memory_space<vmem>>, vector<1x16x64xf32>
    %3 = vector.shape_cast %2 : vector<1x16x64xf32> to vector<16x64xf32>
    %c1 = arith.constant 1 : index
    %c4 = arith.constant 4 : index
    %4 = vector.load %arg9[%c1, %c4] : memref<18x72xf32, #tpu.memory_space<vmem>>, vector<16x64xf32>
    tpu.vector_store %arg9[%c1, %c4], %3 {strides = array<i32>} : memref<18x72xf32, #tpu.memory_space<vmem>>, vector<16x64xf32>,
    %c0_4 = arith.constant 0 : index
    %c0_5 = arith.constant 0 : index
    %5 = vector.load %arg9[%c0_4, %c0_5] : memref<18x72xf32, #tpu.memory_space<vmem>>, vector<16x72xf32>
    %c0_6 = arith.constant 0 : index
    %c0_7 = arith.constant 0 : index
    %c0_8 = arith.constant 0 : index
    %6 = vector.load %arg2[%c0_6, %c0_7, %c0_8] : memref<3x72x128xf32, #tpu.memory_space<vmem>>, vector<1x72x128xf32>
    %7 = vector.shape_cast %6 : vector<1x72x128xf32> to vector<72x128xf32>
    %cst_9 = arith.constant dense<0.000000e+00> : vector<16x128xf32>
    %8 = tpu.matmul %5, %7, %cst_9 {dimension_numbers = #tpu.dot_dimension_numbers<[1], [0], [0], [1], [0, 0, 1, 1], [], []>} : vector<16x72xf32>, vector<72x128xf32>, vector<16x128xf32> -> vector<16x128xf32>
    %c1_10 = arith.constant 1 : index
    %c0_11 = arith.constant 0 : index
    %9 = vector.load %arg9[%c1_10, %c0_11] : memref<18x72xf32, #tpu.memory_space<vmem>>, vector<16x72xf32>
    %c1_12 = arith.constant 1 : index
    %c0_13 = arith.constant 0 : index
    %c0_14 = arith.constant 0 : index
    %10 = vector.load %arg2[%c1_12, %c0_13, %c0_14] : memref<3x72x128xf32, #tpu.memory_space<vmem>>, vector<1x72x128xf32>
    %11 = vector.shape_cast %10 : vector<1x72x128xf32> to vector<72x128xf32>
    %cst_15 = arith.constant dense<0.000000e+00> : vector<16x128xf32>
    %12 = tpu.matmul %9, %11, %cst_15 {dimension_numbers = #tpu.dot_dimension_numbers<[1], [0], [0], [1], [0, 0, 1, 1], [], []>} : vector<16x72xf32>, vector<72x128xf32>, vector<16x128xf32> -> vector<16x128xf32>
    %13 = arith.addf %8, %12 : vector<16x128xf32>
    %c2 = arith.constant 2 : index
    %c0_16 = arith.constant 0 : index
    %14 = vector.load %arg9[%c2, %c0_16] : memref<18x72xf32, #tpu.memory_space<vmem>>, vector<16x72xf32>
    %c2_17 = arith.constant 2 : index
    %c0_18 = arith.constant 0 : index
    %c0_19 = arith.constant 0 : index
    %15 = vector.load %arg2[%c2_17, %c0_18, %c0_19] : memref<3x72x128xf32, #tpu.memory_space<vmem>>, vector<1x72x128xf32>
    %16 = vector.shape_cast %15 : vector<1x72x128xf32> to vector<72x128xf32>
    %cst_20 = arith.constant dense<0.000000e+00> : vector<16x128xf32>
    %17 = tpu.matmul %14, %16, %cst_20 {dimension_numbers = #tpu.dot_dimension_numbers<[1], [0], [0], [1], [0, 0, 1, 1], [], []>} : vector<16x72xf32>, vector<72x128xf32>, vector<16x128xf32> -> vector<16x128xf32>
    %18 = arith.addf %13, %17 : vector<16x128xf32>
    %c0_21 = arith.constant 0 : index
    %c0_22 = arith.constant 0 : index
    %19 = vector.load %arg3[%c0_21, %c0_22] : memref<1x128xf32, #tpu.memory_space<vmem>>, vector<1x128xf32>
    %20 = vector.broadcast %19 : vector<1x128xf32> to vector<16x128xf32>
    %21 = arith.mulf %18, %20 : vector<16x128xf32>
    %c0_23 = arith.constant 0 : index
    %c0_24 = arith.constant 0 : index
    %22 = vector.load %arg4[%c0_23, %c0_24] : memref<1x128xf32, #tpu.memory_space<vmem>>, vector<1x128xf32>
    %23 = vector.broadcast %22 : vector<1x128xf32> to vector<16x128xf32>
    %24 = arith.addf %21, %23 : vector<16x128xf32>
    %cst_25 = arith.constant 0.000000e+00 : f32
    %25 = vector.broadcast %cst_25 : f32 to vector<16x128xf32>
    %26 = arith.maximumf %24, %25 : vector<16x128xf32>
    %cst_26 = arith.constant 0.000000e+00 : f32
    %27 = vector.broadcast %cst_26 : f32 to vector<18x144xf32>
    %c0_27 = arith.constant 0 : index
    %c0_28 = arith.constant 0 : index
    %28 = vector.load %arg10[%c0_27, %c0_28] : memref<18x144xf32, #tpu.memory_space<vmem>>, vector<18x144xf32>
    tpu.vector_store %arg10[%c0_27, %c0_28], %27 {strides = array<i32>} : memref<18x144xf32, #tpu.memory_space<vmem>>, vector<18x144xf32>,
    %c1_29 = arith.constant 1 : index
    %c8 = arith.constant 8 : index
    %29 = vector.load %arg10[%c1_29, %c8] : memref<18x144xf32, #tpu.memory_space<vmem>>, vector<16x128xf32>
    tpu.vector_store %arg10[%c1_29, %c8], %26 {strides = array<i32>} : memref<18x144xf32, #tpu.memory_space<vmem>>, vector<16x128xf32>,
    %c0_30 = arith.constant 0 : index
    %c0_31 = arith.constant 0 : index
    %30 = vector.load %arg10[%c0_30, %c0_31] : memref<18x144xf32, #tpu.memory_space<vmem>>, vector<16x144xf32>
    %c0_32 = arith.constant 0 : index
    %c0_33 = arith.constant 0 : index
    %c0_34 = arith.constant 0 : index
    %31 = vector.load %arg5[%c0_32, %c0_33, %c0_34] : memref<3x144x128xf32, #tpu.memory_space<vmem>>, vector<1x144x128xf32>
    %32 = vector.shape_cast %31 : vector<1x144x128xf32> to vector<144x128xf32>
    %cst_35 = arith.constant dense<0.000000e+00> : vector<16x128xf32>
    %33 = tpu.matmul %30, %32, %cst_35 {dimension_numbers = #tpu.dot_dimension_numbers<[1], [0], [0], [1], [0, 0, 1, 1], [], []>} : vector<16x144xf32>, vector<144x128xf32>, vector<16x128xf32> -> vector<16x128xf32>
    %c1_36 = arith.constant 1 : index
    %c0_37 = arith.constant 0 : index
    %34 = vector.load %arg10[%c1_36, %c0_37] : memref<18x144xf32, #tpu.memory_space<vmem>>, vector<16x144xf32>
    %c1_38 = arith.constant 1 : index
    %c0_39 = arith.constant 0 : index
    %c0_40 = arith.constant 0 : index
    %35 = vector.load %arg5[%c1_38, %c0_39, %c0_40] : memref<3x144x128xf32, #tpu.memory_space<vmem>>, vector<1x144x128xf32>
    %36 = vector.shape_cast %35 : vector<1x144x128xf32> to vector<144x128xf32>
    %cst_41 = arith.constant dense<0.000000e+00> : vector<16x128xf32>
    %37 = tpu.matmul %34, %36, %cst_41 {dimension_numbers = #tpu.dot_dimension_numbers<[1], [0], [0], [1], [0, 0, 1, 1], [], []>} : vector<16x144xf32>, vector<144x128xf32>, vector<16x128xf32> -> vector<16x128xf32>
    %38 = arith.addf %33, %37 : vector<16x128xf32>
    %c2_42 = arith.constant 2 : index
    %c0_43 = arith.constant 0 : index
    %39 = vector.load %arg10[%c2_42, %c0_43] : memref<18x144xf32, #tpu.memory_space<vmem>>, vector<16x144xf32>
    %c2_44 = arith.constant 2 : index
    %c0_45 = arith.constant 0 : index
    %c0_46 = arith.constant 0 : index
    %40 = vector.load %arg5[%c2_44, %c0_45, %c0_46] : memref<3x144x128xf32, #tpu.memory_space<vmem>>, vector<1x144x128xf32>
    %41 = vector.shape_cast %40 : vector<1x144x128xf32> to vector<144x128xf32>
    %cst_47 = arith.constant dense<0.000000e+00> : vector<16x128xf32>
    %42 = tpu.matmul %39, %41, %cst_47 {dimension_numbers = #tpu.dot_dimension_numbers<[1], [0], [0], [1], [0, 0, 1, 1], [], []>} : vector<16x144xf32>, vector<144x128xf32>, vector<16x128xf32> -> vector<16x128xf32>
    %43 = arith.addf %38, %42 : vector<16x128xf32>
    %c0_48 = arith.constant 0 : index
    %c0_49 = arith.constant 0 : index
    %44 = vector.load %arg6[%c0_48, %c0_49] : memref<1x128xf32, #tpu.memory_space<vmem>>, vector<1x128xf32>
    %45 = vector.broadcast %44 : vector<1x128xf32> to vector<16x128xf32>
    %46 = arith.mulf %43, %45 : vector<16x128xf32>
    %c0_50 = arith.constant 0 : index
    %c0_51 = arith.constant 0 : index
    %47 = vector.load %arg7[%c0_50, %c0_51] : memref<1x128xf32, #tpu.memory_space<vmem>>, vector<1x128xf32>
    %48 = vector.broadcast %47 : vector<1x128xf32> to vector<16x128xf32>
    %49 = arith.addf %46, %48 : vector<16x128xf32>
    %cst_52 = arith.constant 0.000000e+00 : f32
    %50 = vector.broadcast %cst_52 : f32 to vector<16x128xf32>
    %51 = arith.maximumf %49, %50 : vector<16x128xf32>
    %c0_53 = arith.constant 0 : index
    %c0_54 = arith.constant 0 : index
    %c0_55 = arith.constant 0 : index
    %52 = vector.load %arg8[%c0_53, %c0_54, %c0_55] : memref<1x16x128xf32, #tpu.memory_space<vmem>>, vector<1x16x128xf32>
    %53 = vector.shape_cast %52 : vector<1x16x128xf32> to vector<16x128xf32>
    %54 = vector.shape_cast %51 : vector<16x128xf32> to vector<1x16x128xf32>
    tpu.vector_store %arg8[%c0_53, %c0_54, %c0_55], %54 {strides = array<i32>} : memref<1x16x128xf32, #tpu.memory_space<vmem>>, vector<1x16x128xf32>,
    return
  }
  func.func @transform_0(%arg0: i32) -> (i32, i32, i32) {
    %c0_i32 = arith.constant 0 : i32
    %c0_i32_0 = arith.constant 0 : i32
    %c0_i32_1 = arith.constant 0 : i32
    return %arg0, %c0_i32, %c0_i32_0 : i32, i32, i32
  }
  func.func @transform_1(%arg0: i32) -> (i32, i32, i32) {
    %c0_i32 = arith.constant 0 : i32
    %c0_i32_0 = arith.constant 0 : i32
    %c0_i32_1 = arith.constant 0 : i32
    %c0_i32_2 = arith.constant 0 : i32
    return %c0_i32, %c0_i32_0, %c0_i32_1 : i32, i32, i32
  }
  func.func @transform_2(%arg0: i32) -> (i32, i32) {
    %c0_i32 = arith.constant 0 : i32
    %c0_i32_0 = arith.constant 0 : i32
    %c0_i32_1 = arith.constant 0 : i32
    return %c0_i32, %c0_i32_0 : i32, i32
  }
  func.func @transform_3(%arg0: i32) -> (i32, i32) {
    %c0_i32 = arith.constant 0 : i32
    %c0_i32_0 = arith.constant 0 : i32
    %c0_i32_1 = arith.constant 0 : i32
    return %c0_i32, %c0_i32_0 : i32, i32
  }
  func.func @transform_4(%arg0: i32) -> (i32, i32, i32) {
    %c0_i32 = arith.constant 0 : i32
    %c0_i32_0 = arith.constant 0 : i32
    %c0_i32_1 = arith.constant 0 : i32
    %c0_i32_2 = arith.constant 0 : i32
    return %c0_i32, %c0_i32_0, %c0_i32_1 : i32, i32, i32
  }
  func.func @transform_5(%arg0: i32) -> (i32, i32) {
    %c0_i32 = arith.constant 0 : i32
    %c0_i32_0 = arith.constant 0 : i32
    %c0_i32_1 = arith.constant 0 : i32
    return %c0_i32, %c0_i32_0 : i32, i32
  }
  func.func @transform_6(%arg0: i32) -> (i32, i32) {
    %c0_i32 = arith.constant 0 : i32
    %c0_i32_0 = arith.constant 0 : i32
    %c0_i32_1 = arith.constant 0 : i32
    return %c0_i32, %c0_i32_0 : i32, i32
  }
  func.func @transform_7(%arg0: i32) -> (i32, i32, i32) {
    %c0_i32 = arith.constant 0 : i32
    %c0_i32_0 = arith.constant 0 : i32
    %c0_i32_1 = arith.constant 0 : i32
    return %arg0, %c0_i32, %c0_i32_0 : i32, i32, i32
  }
}

</mosaic_0001>

<bundles_post_ra>
// kernel: tile.18
= control target key start
LH: loop header
LB: loop body
LE: loop exit
PB: predicated region body
PF: predicated region fallthrough
CT: control target
= control target key end

     0   :  { %s28_s0 = inlined_call_operand.vmem [shape: f32[8], index: 0, kind: input, shape index: {}]   ;;  %s29_s1 = inlined_call_operand.vmem [shape: f32[16,8], index: 1, kind: output, shape index: {}]  }
   0x1   :  { %v4_v0 = vld [vmem:[%s28_s0] ss:$0 sm:$0xff] }
   0x2   :  { %5 = vst [vmem:[%s29_s1] sm:$0xff] %v4_v0  ;;  %8 = vst [vmem:[%s29_s1 + $0x8] sm:$0xff] %v4_v0 }

// kernel: tile.19
= control target key start
LH: loop header
LB: loop body
LE: loop exit
PB: predicated region body
PF: predicated region fallthrough
CT: control target
= control target key end

     0   :  { %s131_s10 = smov 120   ;;  %s132_s11 = smov 104   ;;  %vm3_vm0 = vcmask 64512   ;;  %vm9_vm1 = vcmask 1048512   ;;  %vm15_vm2 = vcmask 982912   ;;  %vm21_vm3 = vcmask 917312   ;;  %s207_s0 = inlined_call_operand.vmem [shape: f32[16,8], index: 0, kind: input, shape index: {}]   ;;  %s208_s1 = inlined_call_operand.vmem [shape: f32[1,128], index: 1, kind: output, shape index: {}]  }
   0x1   :  { %v101_v0 = vld [vmem:[%s207_s0 + $0xf] sm:$0x1]   ;;  %v103_v1 = vld [vmem:[%s207_s0 + $0xd] sm:$0x1]   ;;  %v102_v2 = vld [vmem:[%s207_s0 + $0xe] sm:$0x1]  }
   0x2   :  { %7 = vrot.lane.b32.xlu0 %v101_v0, %s131_s10  ;;  %19 = vrot.lane.b32.xlu1 %v103_v1, %s132_s11  ;;  %v104_v3 = vld [vmem:[%s207_s0 + $0xc] sm:$0x1]   ;;  %s133_s16 = smov 112   ;;  %s134_s17 = smov 96   ;;  %v105_v4 = vld [vmem:[%s207_s0 + $0xb] sm:$0x1]  }
   0x3   :  { %v106_v5 = vld [vmem:[%s207_s0 + $0xa] sm:$0x1]   ;;  %v2_v6 = vld [vmem:[%s207_s0] sm:$0x1]   ;;  %s135_s24 = smov 88   ;;  %s136_s25 = smov 80  }
   0x4   :  { %4 = vst.msk [vmem:[#allocation0] sm:$0x1] %vm3_vm0, %v2_v6   ;;  %v107_v7 = vld [vmem:[%s207_s0 + $0x9] sm:$0x1]   ;;  %v108_v8 = vld [vmem:[%s207_s0 + $0x8] sm:$0x1]  }
   0x5   :  { %s137_s30 = smov 72   ;;  %s138_s2 = smov 64   ;;  %v109_v9 = vld [vmem:[%s207_s0 + $0x7] sm:$0x1]   ;;  %v110_v10 = vld [vmem:[%s207_s0 + $0x6] sm:$0x1]  }
   0x6   :  { %13 = vrot.lane.b32.xlu0 %v102_v2, %s133_s16  ;;  %25 = vrot.lane.b32.xlu1 %v104_v3, %s134_s17  ;;  %s139_s7 = smov 56   ;;  %s140_s8 = smov 48   ;;  %v111_v11 = vld [vmem:[%s207_s0 + $0x5] sm:$0x1]   ;;  %v112_v12 = vld [vmem:[%s207_s0 + $0x4] sm:$0x1]  }
   0x7   :  { %s141_s13 = smov 40   ;;  %s142_s14 = smov 32   ;;  %v113_v13 = vld [vmem:[%s207_s0 + $0x3] sm:$0x1]   ;;  %v114_v14 = vld [vmem:[%s207_s0 + $0x2] sm:$0x1]  }
   0x8   :  { %s143_s19 = smov 24   ;;  %s144_s20 = smov 16   ;;  %v115_v15 = vld [vmem:[%s207_s0 + $0x1] sm:$0x1]   ;;  %vm27_vm4 = vcmask 851712   ;;  %vm33_vm5 = vcmask 786112  }
   0x9   :  { %s145_s0 = smov 8   ;;  %vm39_vm6 = vcmask 720512   ;;  %vm45_vm7 = vcmask 654912   ;;  %vm51_vm8 = vcmask 589312   ;;  %vm57_vm9 = vcmask 523712  }
   0xa   :  { %31 = vrot.lane.b32.xlu0 %v105_v4, %s135_s24  ;;  %37 = vrot.lane.b32.xlu1 %v106_v5, %s136_s25  ;;  %vm63_vm10 = vcmask 458112   ;;  %vm69_vm11 = vcmask 392512   ;;  %vm75_vm12 = vcmask 326912   ;;  %vm81_vm13 = vcmask 261312  }
   0xb   :  { %vm87_vm14 = vcmask 195712   ;;  %vm93_vm15 = vcmask 130112  }
   0xe   :  { %43 = vrot.lane.b32.xlu0 %v107_v7, %s137_s30  ;;  %49 = vrot.lane.b32.xlu1 %v108_v8, %s138_s2 }
  0x12   :  { %55 = vrot.lane.b32.xlu0 %v109_v9, %s139_s7  ;;  %61 = vrot.lane.b32.xlu1 %v110_v10, %s140_s8 }
  0x16   :  { %67 = vrot.lane.b32.xlu0 %v111_v11, %s141_s13  ;;  %73 = vrot.lane.b32.xlu1 %v112_v12, %s142_s14 }
  0x1a   :  { %79 = vrot.lane.b32.xlu0 %v113_v13, %s143_s19  ;;  %85 = vrot.lane.b32.xlu1 %v114_v14, %s144_s20 }
  0x1e   :  { %91 = vrot.lane.b32.xlu0 %v115_v15, %s145_s0 }
  0x74   :  { %v8_v16 = vpop.permute.xlu0 %7   ;;  %v20_v17 = vpop.permute.xlu1 %19  }
  0x75   :  { %10 = vst.msk [vmem:[#allocation0] sm:$0x1] %vm9_vm1, %v8_v16  }
  0x78   :  { %v14_v18 = vpop.permute.xlu0 %13   ;;  %v26_v19 = vpop.permute.xlu1 %25  }
  0x79   :  { %16 = vst.msk [vmem:[#allocation0] sm:$0x1] %vm15_vm2, %v14_v18  }
  0x7a   :  { %22 = vst.msk [vmem:[#allocation0] sm:$0x1] %vm21_vm3, %v20_v17  }
  0x7b   :  { %28 = vst.msk [vmem:[#allocation0] sm:$0x1] %vm27_vm4, %v26_v19  }
  0x7c   :  { %v32_v20 = vpop.permute.xlu0 %31   ;;  %v38_v21 = vpop.permute.xlu1 %37  }
  0x7d   :  { %34 = vst.msk [vmem:[#allocation0] sm:$0x1] %vm33_vm5, %v32_v20  }
  0x7e   :  { %40 = vst.msk [vmem:[#allocation0] sm:$0x1] %vm39_vm6, %v38_v21  }
  0x80   :  { %v44_v22 = vpop.permute.xlu0 %43   ;;  %v50_v23 = vpop.permute.xlu1 %49  }
  0x81   :  { %46 = vst.msk [vmem:[#allocation0] sm:$0x1] %vm45_vm7, %v44_v22  }
  0x82   :  { %52 = vst.msk [vmem:[#allocation0] sm:$0x1] %vm51_vm8, %v50_v23  }
  0x84   :  { %v56_v24 = vpop.permute.xlu0 %55   ;;  %v62_v25 = vpop.permute.xlu1 %61  }
  0x85   :  { %58 = vst.msk [vmem:[#allocation0] sm:$0x1] %vm57_vm9, %v56_v24  }
  0x86   :  { %64 = vst.msk [vmem:[#allocation0] sm:$0x1] %vm63_vm10, %v62_v25  }
  0x88   :  { %v68_v26 = vpop.permute.xlu0 %67   ;;  %v74_v27 = vpop.permute.xlu1 %73  }
  0x89   :  { %70 = vst.msk [vmem:[#allocation0] sm:$0x1] %vm69_vm11, %v68_v26  }
  0x8a   :  { %76 = vst.msk [vmem:[#allocation0] sm:$0x1] %vm75_vm12, %v74_v27  }
  0x8c   :  { %v80_v28 = vpop.permute.xlu0 %79   ;;  %v86_v29 = vpop.permute.xlu1 %85  }
  0x8d   :  { %82 = vst.msk [vmem:[#allocation0] sm:$0x1] %vm81_vm13, %v80_v28  }
  0x8e   :  { %88 = vst.msk [vmem:[#allocation0] sm:$0x1] %vm87_vm14, %v86_v29  }
  0x90   :  { %v92_v30 = vpop.permute.xlu0 %91  }
  0x91   :  { %94 = vst.msk [vmem:[#allocation0] sm:$0x1] %vm93_vm15, %v92_v30  }
  0x98   :  { %v98_v31 = vld [vmem:[#allocation0] sm:$0x1] }
  0x99   :  { %100 = vst [vmem:[%s208_s1] sm:$0x1] %v98_v31 }

// kernel: bridge_forward.1
= control target key start
LH: loop header
LB: loop body
LE: loop exit
PB: predicated region body
PF: predicated region fallthrough
CT: control target
= control target key end

     0   :  { %s1435_s24 = smov 0   ;;  %s1784_s0 = inlined_call_operand.vmem [shape: f32[2,16,64], index: 0, kind: input, shape index: {}]   ;;  %s1785_s1 = inlined_call_operand.vmem [shape: f32[3,72,128], index: 1, kind: input, shape index: {}]   ;;  %s1786_s2 = inlined_call_operand.vmem [shape: f32[1,128], index: 2, kind: input, shape index: {}]   ;;  %s1787_s3 = inlined_call_operand.vmem [shape: f32[1,128], index: 3, kind: input, shape index: {}]   ;;  %s1788_s4 = inlined_call_operand.vmem [shape: f32[3,144,128], index: 4, kind: input, shape index: {}]   ;;  %s1789_s5 = inlined_call_operand.vmem [shape: f32[1,128], index: 5, kind: input, shape index: {}]   ;;  %s1790_s6 = inlined_call_operand.vmem [shape: f32[1,128], index: 6, kind: input, shape index: {}]   ;;  %s1791_s7 = inlined_call_operand.vmem [shape: f32[2,16,128], index: 7, kind: output, shape index: {}]  }
   0x1 LB: > { %s1053_s25 = sadd.s32 4294967295, %s1389_s24   ;;  %p1057_p0 = scmp.ge.s32.totalorder %s1389_s24, 1  ;;  %s1389_s24 = sphi %s1435_s24, %s17_s24  }
   0x2   : > { %p237_p1 = scmp.lt.s32.totalorder %s1389_s24, 3 }
   0x4   : > { %p238_p2 = pnand %p1057_p0, %p237_p1 }
   0x5   : > { %p269_p3 = scmp.lt.s32.totalorder (!%p238_p2), %s1053_s25, 1  ;;  %v1062_v0 = vld [vmem:[%s1785_s1 + $0x48] sm:$0xff] (!%p238_p2)  ;;  %v1063_v1 = vld [vmem:[%s1785_s1 + $0x50] sm:$0xff] (!%p238_p2)  ;;  %v1064_v2 = vld [vmem:[%s1785_s1 + $0x58] sm:$0xff] (!%p238_p2)  ;;  %vm279_vm0 = vcmask (!%p238_p2), 588800   ;;  %vm282_vm1 = vcmask (!%p238_p2), 582656  }
   0x6   : > { %241 = sbr.rel (%p238_p2) target bundleno = 788 (0x314), region = 48  ;;  %v1232_v3 = vpack.c.bf16 (!%p238_p2), %v1063_v1, %v1062_v0  ;;  %v1065_v4 = vld [vmem:[%s1785_s1 + $0x60] sm:$0xff] (!%p238_p2)  ;;  %v1391_v6 = vmov (!%p238_p2), 0.0   ;;  %v1066_v7 = vld [vmem:[%s1785_s1 + $0x68] sm:$0xff] (!%p238_p2)  ;;  %v1067_v8 = vld [vmem:[%s1785_s1 + $0x70] sm:$0xff] (!%p238_p2)  ;;  %s1392_s23 = smov (!%p238_p2), 4  }
   0x7   : > { %v1236_v5 = vpack.c.bf16 (!%p238_p2), %v1065_v4, %v1064_v2  ;;  %280 = vst.msk [vmem:[#allocation2] sm:$0xff] (!%p238_p2), %vm279_vm0, %v1391_v6  ;;  %281 = vst.msk [vmem:[#allocation2 + $0x8] sm:$0xff] (!%p238_p2), %vm279_vm0, %v1391_v6  ;;  %v1240_v9 = vpack.c.bf16 (!%p238_p2), %v1067_v8, %v1066_v7  ;;  %v1068_v11 = vld [vmem:[%s1785_s1 + $0x78] sm:$0xff] (!%p238_p2)  ;;  %v1069_v12 = vld [vmem:[%s1785_s1 + $0x80] sm:$0xff] (!%p238_p2)  ;;  %vm294_vm2 = vcmask (!%p238_p2), 556064   ;;  %vm603_vm3 = vcmask (!%p238_p2), 123904  }
   0x8   : > { %597 = vst [vmem:[#allocation3] sm:$0xff] (!%p238_p2), %v1391_v6  ;;  %600 = vst [vmem:[#allocation3 + $0x10] sm:$0xff] (!%p238_p2), %v1391_v6  ;;  %1233 = vmatprep.subr.bf16.mxu0 (!%p238_p2), %v1232_v3  ;;  %v1244_v14 = vpack.c.bf16 (!%p238_p2), %v1069_v12, %v1068_v11  ;;  %v1070_v15 = vld [vmem:[%s1785_s1 + $0x88] sm:$0xff] (!%p238_p2)  ;;  %v299_v16 = vld [vmem:[%s1785_s1] sm:$0xff] (!%p238_p2)  ;;  %v1393_v53 = vmov (!%p238_p2), 0.0|0.0   ;;  %vm598_vm4 = vcmask (!%p238_p2), 130048  }
   0x9   : > { %602 = vst [vmem:[#allocation3 + $0x20] sm:$0x3] (!%p238_p2), %v1391_v6  ;;  %283 = vst.msk [vmem:[#allocation2 + $0x10] sm:$0x3] (!%p238_p2), %vm282_vm1, %v1391_v6  ;;  %1235 = vmatpush3.bf16.msra.mxu0 (!%p238_p2), %v1232_v3  ;;  %v300_v17 = vld [vmem:[%s1785_s1 + $0x8] sm:$0xff] (!%p238_p2)  ;;  %v301_v22 = vld [vmem:[%s1785_s1 + $0x10] sm:$0xff] (!%p238_p2)  ;;  %1307 = vmatprep.subr.bf16.mxu1 (!%p238_p2), %v1393_v53 }
   0xa   : > { %1237 = vmatprep.subr.bf16.mxu0 (!%p238_p2), %v1236_v5  ;;  %v1248_v18 = vpack.c.bf16 (!%p238_p2), %v300_v17, %v299_v16  ;;  %v302_v23 = vld [vmem:[%s1785_s1 + $0x18] sm:$0xff] (!%p238_p2)  ;;  %v303_v26 = vld [vmem:[%s1785_s1 + $0x20] sm:$0xff] (!%p238_p2)  ;;  %v304_v27 = vld [vmem:[%s1785_s1 + $0x28] sm:$0xff] (!%p238_p2)  ;;  %604 = vst.msk [vmem:[#allocation3 + $0x28] sm:$0x3] (!%p238_p2), %vm603_vm3, %v1391_v6  ;;  %vm607_vm5 = vcmask (!%p238_p2), 1040384  }
   0xb   : > { %v1252_v24 = vpack.c.bf16 (!%p238_p2), %v302_v23, %v301_v22  ;;  %v1256_v29 = vpack.c.bf16 (!%p238_p2), %v304_v27, %v303_v26  ;;  %v305_v30 = vld [vmem:[%s1785_s1 + $0x30] sm:$0xff] (!%p238_p2)  ;;  %v306_v31 = vld [vmem:[%s1785_s1 + $0x38] sm:$0xff] (!%p238_p2)  ;;  %v307_v33 = vld [vmem:[%s1785_s1 + $0x40] sm:$0xff] (!%p238_p2)  ;;  %599 = vst.msk [vmem:[#allocation3 + $0x8] sm:$0xff] (!%p238_p2), %vm598_vm4, %v1391_v6  ;;  %vm628_vm6 = vcmask (!%p238_p2), 1040448   ;;  %vm630_vm7 = vcmask (!%p238_p2), 57344  }
   0xc   : > { %v1260_v32 = vpack.c.bf16 (!%p238_p2), %v306_v31, %v305_v30  ;;  %v1075_v34 = vld [vmem:[%s1785_s1 + $0x90] sm:$0xff] (!%p238_p2)  ;;  %v1076_v35 = vld [vmem:[%s1785_s1 + $0x98] sm:$0xff] (!%p238_p2)  ;;  %v1077_v36 = vld [vmem:[%s1785_s1 + $0xa0] sm:$0xff] (!%p238_p2)  ;;  %601 = vst.msk [vmem:[#allocation3 + $0x18] sm:$0xff] (!%p238_p2), %vm598_vm4, %v1391_v6  ;;  %vm620_vm8 = vcmask (!%p238_p2), 1047617   ;;  %vm622_vm9 = vcmask (!%p238_p2), 64513  }
   0xd   : > { %s1793_s25 = smov (!%p269_p3, %s1053_s25), 1  ;;  %1239 = vmatpush3.bf16.msra.mxu0 %v1236_v5  ;;  %v1078_v37 = vld [vmem:[%s1785_s1 + $0xa8] sm:$0xff]  ;;  %v1264_v38 = vpack.c.bf16 %v1076_v35, %v1075_v34  ;;  %v1079_v41 = vld [vmem:[%s1785_s1 + $0xb0] sm:$0xff]  ;;  %v1080_v42 = vld [vmem:[%s1785_s1 + $0xb8] sm:$0xff]  ;;  %vm624_vm10 = vcmask 1047616   ;;  %vm626_vm11 = vcmask 64512  }
   0xe   : > { %s1134_s15 = sshll.u32 %s1793_s25, 4  ;;  %1241 = vmatprep.subr.bf16.mxu0 %v1240_v9  ;;  %v1268_v39 = vpack.c.bf16 %v1078_v37, %v1077_v36  ;;  %v1272_v44 = vpack.c.bf16 %v1080_v42, %v1079_v41  ;;  %v1081_v45 = vld [vmem:[%s1785_s1 + $0xc0] sm:$0xff]  ;;  %v1082_v46 = vld [vmem:[%s1785_s1 + $0xc8] sm:$0xff]  ;;  %v1083_v48 = vld [vmem:[%s1785_s1 + $0xd0] sm:$0xff]  ;;  %vm683_vm12 = vcmask 1046528   ;;  %vm882_vm13 = vcmask 1045504  }
   0xf   : > { %s273_s18 = scalar_lea.vmem %s1784_s0, %s1134_s15  ;;  %v1276_v47 = vpack.c.bf16 %v1082_v46, %v1081_v45  ;;  %v636_v50 = vld [vmem:[%s1788_s4] sm:$0xff]  ;;  %v637_v51 = vld [vmem:[%s1788_s4 + $0x8] sm:$0xff]  ;;  %v638_v52 = vld [vmem:[%s1788_s4 + $0x10] sm:$0xff]  ;;  %s278_s21 = scalar_lea.vmem %s1791_s7, %s1134_s15 }
  0x10   : > { %v284_v10 = vld [vmem:[%s273_s18] sm:$0xff]  ;;  %v285_v13 = vld [vmem:[%s273_s18 + $0x8] sm:$0xff]  ;;  %v1308_v54 = vpack.c.bf16 %v637_v51, %v636_v50  ;;  %v639_v55 = vld [vmem:[%s1788_s4 + $0x18] sm:$0xff]  ;;  %s1394_s18 = smov 8  }
  0x11   : > { %288 = vrot.lane.b32.xlu0 %v284_v10, %s1392_s23  ;;  %1243 = vmatpush3.bf16.msra.mxu0 %v1240_v9  ;;  %v1088_v56 = vld [vmem:[%s1788_s4 + $0x90] sm:$0xff]  ;;  %v1089_v57 = vld [vmem:[%s1788_s4 + $0x98] sm:$0xff]  ;;  %v1090_v59 = vld [vmem:[%s1788_s4 + $0xa0] sm:$0xff]  ;;  %v1311_v60 = vpack.c.bf16 %v639_v55, %v638_v52 }
  0x12   : > { %1245 = vmatprep.subr.bf16.mxu0 %v1244_v14  ;;  %v1281_v58 = vpack.c.bf16 %v1089_v57, %v1088_v56  ;;  %1309 = vmatpush1.bf16.msra.mxu1 %v1308_v54  ;;  %v1091_v61 = vld [vmem:[%s1788_s4 + $0xa8] sm:$0xff]  ;;  %v640_v62 = vld [vmem:[%s1788_s4 + $0x20] sm:$0xff]  ;;  %v1092_v1 = vld [vmem:[%s1788_s4 + $0xb0] sm:$0xff] }
  0x13   : > { %1310 = vmatprep.subr.bf16.mxu1 %v1393_v53  ;;  %v641_v63 = vld [vmem:[%s1788_s4 + $0x28] sm:$0xff]  ;;  %v1284_v0 = vpack.c.bf16 %v1091_v61, %v1090_v59  ;;  %v1093_v2 = vld [vmem:[%s1788_s4 + $0xb8] sm:$0xff]  ;;  %v642_v4 = vld [vmem:[%s1788_s4 + $0x30] sm:$0xff] }
  0x14   : > { %v1314_v3 = vpack.c.bf16 %v641_v63, %v640_v62  ;;  %v643_v5 = vld [vmem:[%s1788_s4 + $0x38] sm:$0xff]  ;;  %v1287_v7 = vpack.c.bf16 %v1093_v2, %v1092_v1  ;;  %v1094_v8 = vld [vmem:[%s1788_s4 + $0xc0] sm:$0xff]  ;;  %v1095_v9 = vld [vmem:[%s1788_s4 + $0xc8] sm:$0xff] }
  0x15   : > { %290 = vrot.lane.b32.xlu0 %v285_v13, %s1392_s23  ;;  %1247 = vmatpush3.bf16.msra.mxu0 %v1244_v14  ;;  %v1317_v10 = vpack.c.bf16 %v643_v5, %v642_v4  ;;  %v644_v11 = vld [vmem:[%s1788_s4 + $0x40] sm:$0xff]  ;;  %v645_v12 = vld [vmem:[%s1788_s4 + $0x48] sm:$0xff]  ;;  %v1290_v13 = vpack.c.bf16 %v1095_v9, %v1094_v8  ;;  %v1096_v14 = vld [vmem:[%s1788_s4 + $0xd0] sm:$0xff] }
  0x16   : > { %1185 = vmatprep.subr.mxu0 %v1070_v15  ;;  %1312 = vmatpush1.bf16.msra.mxu1 %v1311_v60  ;;  %v1320_v16 = vpack.c.bf16 %v645_v12, %v644_v11  ;;  %v646_v17 = vld [vmem:[%s1788_s4 + $0x50] sm:$0xff]  ;;  %v649_v22 = vld [vmem:[%s1788_s4 + $0x68] sm:$0xff]  ;;  %v1086_v30 = vld [vmem:[%s1786_s2] ss:$0 sm:$0xff] }
  0x17   : > { %1313 = vmatprep.subr.bf16.mxu1 %v1393_v53  ;;  %v650_v26 = vld [vmem:[%s1788_s4 + $0x70] sm:$0xff]  ;;  %v1101_v6 = vld [vmem:[%s1788_s4 + $0xf8] sm:$0xff]  ;;  %v1087_v34 = vld [vmem:[%s1787_s3] ss:$0 sm:$0xff] }
  0x18   : > { %v1100_v31 = vld [vmem:[%s1788_s4 + $0xf0] sm:$0xff]  ;;  %v653_v36 = vld [vmem:[%s1788_s4 + $0x88] sm:$0xff]  ;;  %v1102_v42 = vld [vmem:[%s1788_s4 + $0x100] sm:$0xff] }
  0x19   : > { %1186 = vmatpush3.msra.mxu0 %v1070_v15  ;;  %v1097_v15 = vld [vmem:[%s1788_s4 + $0xd8] sm:$0xff]  ;;  %v1299_v35 = vpack.c.bf16 %v1101_v6, %v1100_v31  ;;  %v1104_v50 = vld [vmem:[%s1788_s4 + $0x110] sm:$0xff]  ;;  %v1111_v59 = vld [vmem:[%s1788_s4 + $0x128] sm:$0xff] }
  0x1a   : > { %1249 = vmatprep.subr.bf16.mxu0 %v1248_v18  ;;  %1315 = vmatpush1.bf16.msra.mxu1 %v1314_v3  ;;  %v1105_v51 = vld [vmem:[%s1788_s4 + $0x118] sm:$0xff]  ;;  %v1112_v61 = vld [vmem:[%s1788_s4 + $0x130] sm:$0xff]  ;;  %v1114_v5 = vld [vmem:[%s1788_s4 + $0x140] sm:$0xff] }
  0x1b   : > { %1316 = vmatprep.subr.bf16.mxu1 %v1393_v53  ;;  %v1305_v52 = vpack.c.bf16 %v1105_v51, %v1104_v50  ;;  %v1120_v6 = vld [vmem:[%s1788_s4 + $0x170] sm:$0xff] }
  0x1e   : > { %1318 = vmatpush1.bf16.msra.mxu1 %v1317_v10 }
  0x1f   : > { %1319 = vmatprep.subr.bf16.mxu1 %v1393_v53 }
  0x22   : > { %1321 = vmatpush1.bf16.msra.mxu1 %v1320_v16 }
  0x23   : > { %1322 = vmatprep.subr.bf16.mxu1 %v1393_v53 }
  0x83   : > { %v289_v19 = vpop.permute.xlu0 %288 }
  0x84   : > { %295 = vst.msk [vmem:[#allocation2 + $0x1] sm:$0xff] %vm294_vm2, %v289_v19  ;;  %v1293_v19 = vpack.c.bf16 %v1097_v15, %v1096_v14 }
  0x87   : > { %v291_v20 = vpop.permute.xlu0 %290 }
  0x88   : > { %296 = vst.msk [vmem:[#allocation2 + $0x9] sm:$0xff] %vm294_vm2, %v291_v20 }
  0x8b   : > { %v308_v21 = vld [vmem:[#allocation2 + $0x1] sm:$0xff] }
  0x8c   : > { %1187 = vmatprep.mubr.msk.f32.mxu0 %vm279_vm0, %v308_v21  ;;  %v297_v28 = vld [vmem:[#allocation2] sm:$0xff] }
  0x8d   : > { %v648_v21 = vld [vmem:[%s1788_s4 + $0x60] sm:$0xff] }
  0x8e   : > { %v1326_v23 = vpack.c.bf16 %v649_v22, %v648_v21 }
  0x8f   : > { %v309_v25 = vld [vmem:[#allocation2 + $0x9] sm:$0xff] }
  0x90   : > { %1188 = vmatmul.mubr.msk.f32.vlgmr.msra.gmra.mrb[0].mxu0 %vm279_vm0, %v309_v25  ;;  %v298_v40 = vld [vmem:[#allocation2 + $0x8] sm:$0xff] }
  0x91   : > { %1251 = vmatpush3.bf16.msra.mxu0 %v1248_v18  ;;  %1208 = vmatprep.mubr.msk.f32.mxu0 %vm279_vm0, %v297_v28  ;;  %v482_v43 = vld [vmem:[#allocation2 + $0x2] sm:$0xff]  ;;  %v483_v49 = vld [vmem:[#allocation2 + $0xa] sm:$0xff]  ;;  %v647_v18 = vld [vmem:[%s1788_s4 + $0x58] sm:$0xff] }
  0x92   : > { %1253 = vmatprep.subr.bf16.mxu0 %v1252_v24  ;;  %v1323_v20 = vpack.c.bf16 %v647_v18, %v646_v17  ;;  %v1099_v25 = vld [vmem:[%s1788_s4 + $0xe8] sm:$0xff]  ;;  %v651_v28 = vld [vmem:[%s1788_s4 + $0x78] sm:$0xff] }
  0x94   : > { %1324 = vmatpush1.bf16.msra.mxu1 %v1323_v20 }
  0x95   : > { %1255 = vmatpush3.bf16.msra.mxu0 %v1252_v24  ;;  %1325 = vmatprep.subr.bf16.mxu1 %v1393_v53  ;;  %v1098_v24 = vld [vmem:[%s1788_s4 + $0xe0] sm:$0xff] }
  0x96   : > { %1257 = vmatprep.subr.bf16.mxu0 %v1256_v29  ;;  %v1296_v27 = vpack.c.bf16 %v1099_v25, %v1098_v24  ;;  %v1117_v24 = vld [vmem:[%s1788_s4 + $0x158] sm:$0xff] }
  0x98   : > { %1327 = vmatpush1.bf16.msra.mxu1 %v1326_v23  ;;  %v1116_v23 = vld [vmem:[%s1788_s4 + $0x150] sm:$0xff] }
  0x99   : > { %1259 = vmatpush3.bf16.msra.mxu0 %v1256_v29  ;;  %1328 = vmatprep.subr.bf16.mxu1 %v1393_v53  ;;  %v1329_v29 = vpack.c.bf16 %v651_v28, %v650_v26 }
  0x9a   : > { %1261 = vmatprep.subr.bf16.mxu0 %v1260_v32 }
  0x9c   : > { %1330 = vmatpush1.bf16.msra.mxu1 %v1329_v29  ;;  %v1118_v29 = vld [vmem:[%s1788_s4 + $0x160] sm:$0xff] }
  0x9d   : > { %1263 = vmatpush3.bf16.msra.mxu0 %v1260_v32  ;;  %v652_v32 = vld [vmem:[%s1788_s4 + $0x80] sm:$0xff]  ;;  %1331 = vmatprep.subr.bf16.mxu1 %v1393_v53 }
  0x9e   : > { %1206 = vmatprep.subr.mxu0 %v307_v33 }
  0xa1   : > { %1207 = vmatpush3.msra.mxu0 %v307_v33 }
  0xa2   : > { %1209 = vmatmul.mubr.msk.f32.vlgmr.msra.gmra.mrb[0].mxu0 %vm279_vm0, %v298_v40  ;;  %1265 = vmatprep.subr.bf16.mxu0 %v1264_v38 }
  0xa3   : > { %1267 = vmatpush3.bf16.msra.mxu0 %v1264_v38  ;;  %1229 = vmatprep.mubr.msk.f32.mxu0 %vm279_vm0, %v482_v43  ;;  %v1103_v43 = vld [vmem:[%s1788_s4 + $0x108] sm:$0xff] }
  0xa4   : > { %1269 = vmatprep.subr.bf16.mxu0 %v1268_v39  ;;  %v1302_v45 = vpack.c.bf16 %v1103_v43, %v1102_v42 }
  0xa7   : > { %1271 = vmatpush3.bf16.msra.mxu0 %v1268_v39  ;;  %v1332_v39 = vpack.c.bf16 %v653_v36, %v652_v32  ;;  %v1121_v32 = vld [vmem:[%s1788_s4 + $0x178] sm:$0xff] }
  0xa8   : > { %1273 = vmatprep.subr.bf16.mxu0 %v1272_v44 }
  0xa9   : > { %1333 = vmatpush1.bf16.msra.mxu1 %v1332_v39 }
  0xaa   : > { %1334 = vmatprep.subr.bf16.mxu1 %v1393_v53 }
  0xab   : > { %1275 = vmatpush3.bf16.msra.mxu0 %v1272_v44 }
  0xac   : > { %1277 = vmatprep.subr.bf16.mxu0 %v1276_v47 }
  0xaf   : > { %1279 = vmatpush3.bf16.msra.mxu0 %v1276_v47 }
  0xb0   : > { %1227 = vmatprep.subr.mxu0 %v1083_v48 }
  0xb3   : > { %1228 = vmatpush3.msra.mxu0 %v1083_v48 }
  0xb4   : > { %1230 = vmatmul.mubr.msk.f32.vlgmr.msra.gmra.mrb[0].mxu0 %vm279_vm0, %v483_v49  ;;  %1280 = vmatprep.subr.bf16.mxu0 %v1393_v53 }
  0xb5   : > { %1282 = vmatpush1.bf16.msra.mxu0 %v1281_v58  ;;  %v1110_v58 = vld [vmem:[%s1788_s4 + $0x120] sm:$0xff] }
  0xb6   : > { %1283 = vmatprep.subr.bf16.mxu0 %v1393_v53  ;;  %v1335_v60 = vpack.c.bf16 %v1111_v59, %v1110_v58  ;;  %v1130_v58 = vld [vmem:[%s1789_s5] ss:$0 sm:$0xff] }
  0xb9   : > { %1285 = vmatpush1.bf16.msra.mxu0 %v1284_v0  ;;  %v1113_v0 = vld [vmem:[%s1788_s4 + $0x138] sm:$0xff] }
  0xba   : > { %1286 = vmatprep.subr.bf16.mxu0 %v1393_v53  ;;  %v1338_v4 = vpack.c.bf16 %v1113_v0, %v1112_v61  ;;  %v1131_v61 = vld [vmem:[%s1790_s6] ss:$0 sm:$0xff] }
  0xbd   : > { %1288 = vmatpush1.bf16.msra.mxu0 %v1287_v7  ;;  %v1115_v7 = vld [vmem:[%s1788_s4 + $0x148] sm:$0xff] }
  0xbe   : > { %1289 = vmatprep.subr.bf16.mxu0 %v1393_v53  ;;  %v1341_v17 = vpack.c.bf16 %v1115_v7, %v1114_v5 }
  0xc1   : > { %1291 = vmatpush1.bf16.msra.mxu0 %v1290_v13 }
  0xc2   : > { %1292 = vmatprep.subr.bf16.mxu0 %v1393_v53 }
  0xc5   : > { %1294 = vmatpush1.bf16.msra.mxu0 %v1293_v19 }
  0xc6   : > { %1295 = vmatprep.subr.bf16.mxu0 %v1393_v53 }
  0xc9   : > { %1297 = vmatpush1.bf16.msra.mxu0 %v1296_v27  ;;  %v1344_v27 = vpack.c.bf16 %v1117_v24, %v1116_v23 }
  0xca   : > { %1298 = vmatprep.subr.bf16.mxu0 %v1393_v53 }
  0xcd   : > { %1300 = vmatpush1.bf16.msra.mxu0 %v1299_v35  ;;  %v1123_v35 = vld [vmem:[%s1788_s4 + $0x188] sm:$0xff] }
  0xce   : > { %1301 = vmatprep.subr.bf16.mxu0 %v1393_v53 }
  0xd1   : > { %1303 = vmatpush1.bf16.msra.mxu0 %v1302_v45 }
  0xd2   : > { %1304 = vmatprep.subr.bf16.mxu0 %v1393_v53 }
  0xd5   : > { %1306 = vmatpush1.bf16.msra.mxu0 %v1305_v52 }
 0x187   : > { %v1231_v33 = vpop.f32.mrb[0].mxu0 }
 0x188   : > { %v585_v37 = vmul.f32 %v1231_v33, %v1086_v30  ;;  %v566_v38 = vpop.f32.mrb[1].mxu0  ;;  %v1350_v33 = vpack.c.bf16 %v1121_v32, %v1120_v6 }
 0x189   : > { %v584_v40 = vmul.f32 %v1086_v30, %v566_v38  ;;  %v1119_v30 = vld [vmem:[%s1788_s4 + $0x168] sm:$0xff]  ;;  %v1125_v38 = vld [vmem:[%s1788_s4 + $0x198] sm:$0xff] }
 0x18a   : > { %v594_v41 = vadd.f32 %v1087_v34, %v585_v37  ;;  %v1347_v31 = vpack.c.bf16 %v1119_v30, %v1118_v29  ;;  %v1124_v37 = vld [vmem:[%s1788_s4 + $0x190] sm:$0xff] }
 0x18b   : > { %v593_v44 = vadd.f32 %v1087_v34, %v584_v40  ;;  %v1122_v34 = vld [vmem:[%s1788_s4 + $0x180] sm:$0xff]  ;;  %v1356_v39 = vpack.c.bf16 %v1125_v38, %v1124_v37 }
 0x18c   : > { %v596_v46 = vmax.f32 %v594_v41, 0.0  ;;  %v1353_v36 = vpack.c.bf16 %v1123_v35, %v1122_v34  ;;  %v1126_v40 = vld [vmem:[%s1788_s4 + $0x1a0] sm:$0xff]  ;;  %v1127_v41 = vld [vmem:[%s1788_s4 + $0x1a8] sm:$0xff] }
 0x18d   : > { %v595_v47 = vmax.f32 %v593_v44, 0.0  ;;  %v1359_v42 = vpack.c.bf16 %v1127_v41, %v1126_v40 }
 0x18e   : > { %v609_v48 = vrot.slane %v596_v46, 7 }
 0x18f   : > { %v608_v49 = vrot.slane %v595_v47, 7 }
 0x190   : > { %615 = vrot.lane.b32.xlu0 %v609_v48, %s1394_s18 }
 0x191   : > { %611 = vrot.lane.b32.xlu1 %v608_v49, %s1394_s18  ;;  %v610_v54 = vsel %vm607_vm5, %v608_v49, %v609_v48 }
 0x195   : > { %613 = vrot.lane.b32.xlu1 %v610_v54, %s1394_s18 }
 0x202   : > { %v616_v55 = vpop.permute.xlu0 %615 }
 0x203   : > { %629 = vst.msk [vmem:[#allocation3 + $0x20] sm:$0x1] %vm628_vm6, %v616_v55  ;;  %v612_v56 = vpop.permute.xlu1 %611 }
 0x204   : > { %631 = vst.msk [vmem:[#allocation3 + $0x28] sm:$0x1] %vm630_vm7, %v616_v55 }
 0x205   : > { %621 = vst.msk [vmem:[#allocation3] sm:$0xfe] %vm620_vm8, %v612_v56 }
 0x206   : > { %623 = vst.msk [vmem:[#allocation3 + $0x8] sm:$0xfe] %vm622_vm9, %v612_v56 }
 0x207   : > { %v614_v57 = vpop.permute.xlu1 %613 }
 0x208   : > { %625 = vst.msk [vmem:[#allocation3 + $0x10] sm:$0xff] %vm624_vm10, %v614_v57 }
 0x209   : > { %627 = vst.msk [vmem:[#allocation3 + $0x18] sm:$0xff] %vm626_vm11, %v614_v57 }
 0x20a   : > { %v656_v22 = vld [vmem:[#allocation3 + $0x20] sm:$0x1] }
 0x20b   : > { %v657_v12 = vld [vmem:[#allocation3 + $0x28] sm:$0x1]  ;;  %v690_v26 = vrot.slane %v656_v22, 1  ;;  %v857_v48 = vld [vmem:[#allocation3 + $0x20] sm:$0x3] }
 0x20c   : > { %v632_v63 = vld [vmem:[#allocation3] sm:$0xff]  ;;  %v692_v21 = vrot.slane %v657_v12, 1  ;;  %v858_v45 = vld [vmem:[#allocation3 + $0x28] sm:$0x3]  ;;  %v889_v51 = vrot.slane %v857_v48, 2 }
 0x20d   : > { %v633_v62 = vld [vmem:[#allocation3 + $0x8] sm:$0xff]  ;;  %v654_v3 = vld [vmem:[#allocation3] sm:$0xfe]  ;;  %v891_v47 = vrot.slane %v858_v45, 2 }
 0x20e   : > { %1108 = vmatprep.mubr.msk.f32.mxu1 %vm598_vm4, %v633_v62  ;;  %v655_v1 = vld [vmem:[#allocation3 + $0x8] sm:$0xfe]  ;;  %v684_v16 = vrot.slane %v654_v3, 1  ;;  %v855_v43 = vld [vmem:[#allocation3] sm:$0xfc] }
 0x20f   : > { %v856_v2 = vld [vmem:[#allocation3 + $0x8] sm:$0xfc]  ;;  %845 = vmatmul.mubr.f32.vlgmr.msra.gmra.mrb[0].mxu1 %v632_v63  ;;  %v1706_v9 = vld [vmem:[#allocation3 + $0x10] sm:$0xff]  ;;  %v687_v10 = vrot.slane %v655_v1, 1  ;;  %v883_v46 = vrot.slane %v855_v43, 2 }
 0x210   : > { %1336 = vmatpush1.bf16.msra.mxu1 %v1335_v60  ;;  %v1703_v8 = vld [vmem:[#allocation3 + $0x18] sm:$0xff]  ;;  %v886_v11 = vrot.slane %v856_v2, 2  ;;  %v685_v15 = vrot.slane %v1706_v9, 1  ;;  %v884_v44 = vrot.slane %v1706_v9, 2 }
 0x211   : > { %1337 = vmatprep.subr.bf16.mxu1 %v1393_v53  ;;  %v688_v13 = vrot.slane %v1703_v8, 1  ;;  %1109 = vmatprep.mubr.msk.f32.mxu1 %vm598_vm4, %v1703_v8  ;;  %v887_v14 = vrot.slane %v1703_v8, 2 }
 0x212   : > { %v686_v20 = vsel %vm683_vm12, %v684_v16, %v685_v15  ;;  %v691_v28 = vsel %vm683_vm12, %v685_v15, %v690_v26  ;;  %v885_v49 = vsel %vm882_vm13, %v883_v46, %v884_v44  ;;  %v890_v52 = vsel %vm882_vm13, %v884_v44, %v889_v51 }
 0x213   : > { %850 = vmatmul.mubr.f32.gmra.mrb[2].mxu1 %v1706_v9  ;;  %v689_v18 = vsel %vm683_vm12, %v687_v10, %v688_v13  ;;  %v888_v19 = vsel %vm882_vm13, %v886_v11, %v887_v14  ;;  %v693_v25 = vsel %vm683_vm12, %v688_v13, %v692_v21  ;;  %v892_v50 = vsel %vm882_vm13, %v887_v14, %v891_v47 }
 0x214   : > { %1339 = vmatpush1.bf16.msra.mxu1 %v1338_v4  ;;  %1106 = vmatprep.mubr.msk.f32.mxu0 %vm598_vm4, %v689_v18 }
 0x215   : > { %1128 = vmatprep.mubr.msk.f32.mxu1 %vm598_vm4, %v888_v19  ;;  %765 = vmatmul.mubr.f32.vlgmr.msra.gmra.mrb[2].mxu0 %v686_v20 }
 0x216   : > { %1340 = vmatprep.subr.bf16.mxu1 %v1393_v53  ;;  %1107 = vmatprep.mubr.msk.f32.mxu0 %vm598_vm4, %v693_v25 }
 0x218   : > { %1342 = vmatpush1.bf16.msra.mxu1 %v1341_v17 }
 0x219   : > { %1343 = vmatprep.subr.bf16.mxu1 %v1393_v53  ;;  %770 = vmatmul.mubr.f32.gmra.mrb[4].mxu0 %v691_v28 }
 0x21c   : > { %1345 = vmatpush1.bf16.msra.mxu1 %v1344_v27 }
 0x21d   : > { %1346 = vmatprep.subr.bf16.mxu1 %v1393_v53 }
 0x220   : > { %1348 = vmatpush1.bf16.msra.mxu1 %v1347_v31 }
 0x221   : > { %1349 = vmatprep.subr.bf16.mxu1 %v1393_v53 }
 0x224   : > { %1351 = vmatpush1.bf16.msra.mxu1 %v1350_v33 }
 0x225   : > { %1352 = vmatprep.subr.bf16.mxu1 %v1393_v53 }
 0x228   : > { %1354 = vmatpush1.bf16.msra.mxu1 %v1353_v36 }
 0x229   : > { %1355 = vmatprep.subr.bf16.mxu1 %v1393_v53 }
 0x22c   : > { %1357 = vmatpush1.bf16.msra.mxu1 %v1356_v39 }
 0x22d   : > { %1358 = vmatprep.subr.bf16.mxu1 %v1393_v53 }
 0x230   : > { %1360 = vmatpush1.bf16.msra.mxu1 %v1359_v42 }
 0x233   : > { %964 = vmatmul.mubr.f32.vlgmr.msra.gmra.mrb[0].mxu1 %v885_v49 }
 0x234   : > { %1129 = vmatprep.mubr.msk.f32.mxu1 %vm598_vm4, %v892_v50 }
 0x237   : > { %969 = vmatmul.mubr.f32.gmra.mrb[2].mxu1 %v890_v52 }
 0x2e8   : > { %v766_v53 = vpop.f32.mrb[2].mxu0 }
 0x2e9   : > { %v768_v54 = vpop.f32.mrb[3].mxu0 }
 0x2ec   : > { %v771_v55 = vpop.f32.mrb[4].mxu0 }
 0x2ed   : > { %v773_v56 = vpop.f32.mrb[5].mxu0 }
 0x306   : > { %v965_v57 = vpop.f32.mrb[0].mxu1 }
 0x307   : > { %v1361_v59 = vadd.f32 %v965_v57, %v766_v53  ;;  %v967_v60 = vpop.f32.mrb[1].mxu1 }
 0x309   : > { %v983_v62 = vmul.f32 %v1361_v59, %v1130_v58 }
 0x30a   : > { %v970_v63 = vpop.f32.mrb[2].mxu1 }
 0x30b   : > { %v992_v0 = vadd.f32 %v1131_v61, %v983_v62  ;;  %v1362_v1 = vadd.f32 %v970_v63, %v771_v55  ;;  %v972_v2 = vpop.f32.mrb[3].mxu1 }
 0x30d   : > { %v994_v3 = vmax.f32 %v992_v0, 0.0  ;;  %v984_v4 = vmul.f32 %v1362_v1, %v1130_v58 }
 0x30f   : > { %996 = vst [vmem:[%s278_s21] sm:$0xff] %v994_v3  ;;  %v993_v5 = vadd.f32 %v1131_v61, %v984_v4 }
 0x311   : > { %v995_v7 = vmax.f32 %v993_v5, 0.0 }
 0x313   : > { %997 = vst [vmem:[%s278_s21 + $0x8] sm:$0xff] %v995_v7 }
 0x314 PF: > { %s17_s24 = sadd.s32 1, %s1389_s24  }
 0x315   : > { %p14_p4 = scmp.ge.s32.totalorder %s17_s24, 4  }
 0x317   :  { %16 = sbr.rel (!%p14_p4) target bundleno = 1 (0x1), region = 82 }

</bundles_post_ra>
